<compile_context>
chip_gen: v6e
topology: v6e:2x2x1
jax: 0.10.0
libtpu: 0.0.40
codegen_flags: <defaults>
</compile_context>

<pallas_src>
import functools
import math

import jax
import jax.numpy as jnp
from jax.experimental import pallas as pl
from jax.experimental.pallas import tpu as pltpu


def _round_up(x, m):
    return (x + m - 1) // m * m


def _mlp_kernel(*refs, num_layers, negative_slope):
    """refs = (x_ref, w0_ref, b0_ref, w1_ref, b1_ref, ..., o_ref).

    Computes, entirely in VMEM:
        h = x @ W0 + b0
        for l in 1..L-1:  h = leaky_relu(h) @ Wl + bl
    Weights are pre-transposed to [in, out], so the MXU is fed directly.
    """
    x_ref = refs[0]
    o_ref = refs[-1]
    wb = refs[1:-1]

    h = x_ref[...]
    # NOTE: for deep MLPs with uniform hidden width, stack hidden weights into a
    # (L, d, d) array and use lax.fori_loop here to bound per-layer live ranges.
    for l in range(num_layers):
        if l > 0:
            # leaky_relu on the previous layer's output, in f32 on the VPU.
            h = jnp.where(h >= 0, h, negative_slope * h)
        w = wb[2 * l][...]
        b = wb[2 * l + 1][...]
        # x @ W with f32 accumulation on the MXU; operands take the weight dtype
        # (f32 here; bf16 if params were prepared with mxu_dtype=bf16).
        # If bit-exact f32 accumulation is required, additionally pass
        # precision=jax.lax.Precision.HIGHEST for f32 operands.
        h = jnp.dot(h.astype(w.dtype), w, preferred_element_type=jnp.float32)
        h = h + b.astype(jnp.float32)
    o_ref[...] = h.astype(o_ref.dtype)


def init_nn_params(key, in_size, out_size, layers=()):
    """Deterministic init mirroring nn.Linear default (uniform +-1/sqrt(fan_in)).

    Returns PyTorch-convention params: list of (W [out, in], b [out]).
    """
    dims = [in_size] + list(layers) + [out_size]
    params = []
    for i in range(len(dims) - 1):
        fan_in, fan_out = dims[i], dims[i + 1]
        key, kw, kb = jax.random.split(key, 3)
        bound = 1.0 / math.sqrt(fan_in)
        w = jax.random.uniform(kw, (fan_out, fan_in), jnp.float32, -bound, bound)
        b = jax.random.uniform(kb, (fan_out,), jnp.float32, -bound, bound)
        params.append((w, b))
    return params


def prepare_params(params, mxu_dtype=jnp.float32):
    """One-time host-side prep: transpose to [in, out] and zero-pad to 128 lanes.

    Use mxu_dtype=jnp.bfloat16 on v6e/v7x for ~2-4x MXU throughput and half the
    resident weight VMEM (loosen numeric tolerances accordingly).
    """
    prepared = []
    for w, b in params:
        out_dim, in_dim = w.shape
        in_pad = _round_up(in_dim, 128)
        out_pad = _round_up(out_dim, 128)
        w_t = jnp.zeros((in_pad, out_pad), mxu_dtype)
        w_t = w_t.at[:in_dim, :out_dim].set(w.T.astype(mxu_dtype))
        b_p = jnp.zeros((1, out_pad), jnp.float32)
        b_p = b_p.at[0, :out_dim].set(b)
        prepared.append((w_t, b_p))
    return prepared


@functools.partial(
    jax.jit,
    static_argnames=("out_size", "negative_slope", "batch_tile", "out_dtype"),
)
def nn_forward(x, prepared_params, out_size, *, negative_slope=0.01,
               batch_tile=512, out_dtype=jnp.float32):
    """Matches NN.forward: linear, then (leaky_relu -> linear) for each layer."""
    batch, in_dim = x.shape
    num_layers = len(prepared_params)
    act_dtype = prepared_params[0][0].dtype          # MXU operand dtype
    dims_pad = [prepared_params[0][0].shape[0]] + [w.shape[1] for w, _ in prepared_params]
    in_pad, out_pad = dims_pad[0], dims_pad[-1]
    widest = max(dims_pad)

    a_isz = jnp.dtype(act_dtype).itemsize
    o_isz = jnp.dtype(out_dtype).itemsize
    # Resident (single-buffered) weight + bias bytes.
    wb_bytes = sum(dims_pad[l] * dims_pad[l + 1] * a_isz + dims_pad[l + 1] * 4
                   for l in range(num_layers))

    def footprint(bt):
        # Double-buffered pipelined x / out tiles + resident weights/biases
        # + live f32 intermediates inside the body (~2 widest activations).
        io = 2 * bt * in_pad * a_isz + 2 * bt * out_pad * o_isz
        inter = 2 * bt * widest * 4
        return io + wb_bytes + inter

    # --- batch tile: multiple of 8 sublanes, fit a conservative VMEM budget
    # (v7x only has 64 MiB), and give the ("parallel",) grid >= 2 steps so
    # both v7x TensorCores get work. -----------------------------------------
    vmem_budget = 48 << 20
    bt = _round_up(min(batch_tile, _round_up(batch, 8)), 8)
    while bt > 8 and footprint(bt) > vmem_budget:
        bt = _round_up(bt // 2, 8)
    if _round_up(batch, bt) // bt < 2:
        bt = max(8, _round_up(bt // 2, 8))
    batch_pad = max(_round_up(batch, bt), 2 * bt)

    # --- pad/cast x only when needed (skip the extra HBM copy if aligned) ----
    if batch_pad == batch and in_pad == in_dim:
        x_p = x.astype(act_dtype)
    else:
        x_p = jnp.zeros((batch_pad, in_pad), act_dtype)
        x_p = x_p.at[:batch, :in_dim].set(x.astype(act_dtype))

    flat_wb = []
    in_specs = [pl.BlockSpec((bt, in_pad), lambda i: (i, 0))]
    for w, b in prepared_params:
        flat_wb.append(w)
        flat_wb.append(b)
        # Constant block index + single buffering: DMA'd once, VMEM-resident
        # across the whole batch grid, no wasted double-buffer allocation.
        in_specs.append(pl.BlockSpec(w.shape, lambda i: (0, 0),
                                     pipeline_mode=pl.Buffered(1)))
        in_specs.append(pl.BlockSpec(b.shape, lambda i: (0, 0),
                                     pipeline_mode=pl.Buffered(1)))

    flops = 2 * batch_pad * sum(dims_pad[l] * dims_pad[l + 1]
                                for l in range(num_layers))
    bytes_accessed = (batch_pad * in_pad * a_isz + wb_bytes
                      + batch_pad * out_pad * o_isz)
    cost = pl.CostEstimate(flops=flops, transcendentals=0,
                           bytes_accessed=bytes_accessed)

    # Explicit scoped-VMEM limit derived from the footprint (2x margin for
    # compiler temporaries / in case single-buffering is not honored), clamped
    # to the physical VMEM range.
    vmem_limit = int(min(128 << 20, max(32 << 20, 2 * footprint(bt) + (8 << 20))))

    out = pl.pallas_call(
        functools.partial(_mlp_kernel,
                          num_layers=num_layers,
                          negative_slope=negative_slope),
        out_shape=jax.ShapeDtypeStruct((batch_pad, out_pad), out_dtype),
        grid_spec=pltpu.PrefetchScalarGridSpec(
            num_scalar_prefetch=0,
            grid=(batch_pad // bt,),
            in_specs=in_specs,
            out_specs=pl.BlockSpec((bt, out_pad), lambda i: (i, 0)),
        ),
        compiler_params=pltpu.CompilerParams(
            dimension_semantics=("parallel",),
            vmem_limit_bytes=vmem_limit),
        cost_estimate=cost,
    )(x_p, *flat_wb)

    return out[:batch, :out_size]


if __name__ == "__main__":
    key = jax.random.PRNGKey(0)
    k_in, k_params = jax.random.split(key)

    in_size, out_size = 32, 16
    hidden_layers = [64, 48]
    batch = 8

    x = jax.random.normal(k_in, (batch, in_size), dtype=jnp.float32)
    params = init_nn_params(k_params, in_size, out_size, hidden_layers)
    # On v6e/v7x prefer prepare_params(params, mxu_dtype=jnp.bfloat16).
    prepared = prepare_params(params)

    out = nn_forward(x, prepared, out_size)
    jax.block_until_ready(out)

    # Pure-JAX reference (PyTorch-layout params, no padding, no Pallas).
    ref = x @ params[0][0].T + params[0][1]
    for w, b in params[1:]:
        ref = jnp.where(ref >= 0, ref, 0.01 * ref)
        ref = ref @ w.T + b

    assert out.shape == (batch, out_size)
    # Tolerance covers possible TPU default (bf16-pass) matmul precision of the
    # XLA reference vs. the kernel's explicit-f32 MXU accumulation.
    assert jnp.allclose(out, ref, atol=2e-2, rtol=2e-2), float(jnp.abs(out - ref).max())

    print("KERNEL_OK")
</pallas_src>

<mosaic_0001>
module attributes {stable_mosaic.version = 11 : i64} {
  func.func @_mlp_kernel(%arg0: i32, %arg1: memref<8x128xf32, #tpu.memory_space<vmem>>, %arg2: memref<128x128xf32, #tpu.memory_space<vmem>>, %arg3: memref<1x128xf32, #tpu.memory_space<vmem>>, %arg4: memref<128x128xf32, #tpu.memory_space<vmem>>, %arg5: memref<1x128xf32, #tpu.memory_space<vmem>>, %arg6: memref<128x128xf32, #tpu.memory_space<vmem>>, %arg7: memref<1x128xf32, #tpu.memory_space<vmem>>, %arg8: memref<8x128xf32, #tpu.memory_space<vmem>>) attributes {dimension_semantics = [#tpu.dimension_semantics<parallel>], iteration_bounds = array<i64: 2>, scalar_prefetch = 0 : i64, scratch_operands = 0 : i64, tpu.core_type = #tpu.core_type<tc>, window_params = [{transform_indices = @transform_0, window_bounds = array<i64: 8, 128>}, {pipeline_mode = #tpu.pipeline_mode<synchronous>, transform_indices = @transform_1, window_bounds = array<i64: 128, 128>}, {pipeline_mode = #tpu.pipeline_mode<synchronous>, transform_indices = @transform_2, window_bounds = array<i64: 1, 128>}, {pipeline_mode = #tpu.pipeline_mode<synchronous>, transform_indices = @transform_3, window_bounds = array<i64: 128, 128>}, {pipeline_mode = #tpu.pipeline_mode<synchronous>, transform_indices = @transform_4, window_bounds = array<i64: 1, 128>}, {pipeline_mode = #tpu.pipeline_mode<synchronous>, transform_indices = @transform_5, window_bounds = array<i64: 128, 128>}, {pipeline_mode = #tpu.pipeline_mode<synchronous>, transform_indices = @transform_6, window_bounds = array<i64: 1, 128>}, {transform_indices = @transform_7, window_bounds = array<i64: 8, 128>}]} {
    %c0 = arith.constant 0 : index
    %c0_0 = arith.constant 0 : index
    %0 = vector.load %arg1[%c0, %c0_0] : memref<8x128xf32, #tpu.memory_space<vmem>>, vector<8x128xf32>
    %c0_1 = arith.constant 0 : index
    %c0_2 = arith.constant 0 : index
    %1 = vector.load %arg2[%c0_1, %c0_2] : memref<128x128xf32, #tpu.memory_space<vmem>>, vector<128x128xf32>
    %c0_3 = arith.constant 0 : index
    %c0_4 = arith.constant 0 : index
    %2 = vector.load %arg3[%c0_3, %c0_4] : memref<1x128xf32, #tpu.memory_space<vmem>>, vector<1x128xf32>
    %cst = arith.constant dense<0.000000e+00> : vector<8x128xf32>
    %3 = tpu.matmul %0, %1, %cst {dimension_numbers = #tpu.dot_dimension_numbers<[1], [0], [0], [1], [0, 0, 1, 1], [], []>} : vector<8x128xf32>, vector<128x128xf32>, vector<8x128xf32> -> vector<8x128xf32>
    %4 = vector.broadcast %2 : vector<1x128xf32> to vector<8x128xf32>
    %5 = arith.addf %3, %4 : vector<8x128xf32>
    %cst_5 = arith.constant 0.000000e+00 : f32
    %6 = vector.broadcast %cst_5 : f32 to vector<8x128xf32>
    %7 = arith.cmpf oge, %5, %6 : vector<8x128xf32>
    %cst_6 = arith.constant 0.00999999977 : f32
    %8 = vector.broadcast %cst_6 : f32 to vector<8x128xf32>
    %9 = arith.mulf %8, %5 : vector<8x128xf32>
    %10 = arith.select %7, %5, %9 : vector<8x128xi1>, vector<8x128xf32>
    %c0_7 = arith.constant 0 : index
    %c0_8 = arith.constant 0 : index
    %11 = vector.load %arg4[%c0_7, %c0_8] : memref<128x128xf32, #tpu.memory_space<vmem>>, vector<128x128xf32>
    %c0_9 = arith.constant 0 : index
    %c0_10 = arith.constant 0 : index
    %12 = vector.load %arg5[%c0_9, %c0_10] : memref<1x128xf32, #tpu.memory_space<vmem>>, vector<1x128xf32>
    %cst_11 = arith.constant dense<0.000000e+00> : vector<8x128xf32>
    %13 = tpu.matmul %10, %11, %cst_11 {dimension_numbers = #tpu.dot_dimension_numbers<[1], [0], [0], [1], [0, 0, 1, 1], [], []>} : vector<8x128xf32>, vector<128x128xf32>, vector<8x128xf32> -> vector<8x128xf32>
    %14 = vector.broadcast %12 : vector<1x128xf32> to vector<8x128xf32>
    %15 = arith.addf %13, %14 : vector<8x128xf32>
    %cst_12 = arith.constant 0.000000e+00 : f32
    %16 = vector.broadcast %cst_12 : f32 to vector<8x128xf32>
    %17 = arith.cmpf oge, %15, %16 : vector<8x128xf32>
    %cst_13 = arith.constant 0.00999999977 : f32
    %18 = vector.broadcast %cst_13 : f32 to vector<8x128xf32>
    %19 = arith.mulf %18, %15 : vector<8x128xf32>
    %20 = arith.select %17, %15, %19 : vector<8x128xi1>, vector<8x128xf32>
    %c0_14 = arith.constant 0 : index
    %c0_15 = arith.constant 0 : index
    %21 = vector.load %arg6[%c0_14, %c0_15] : memref<128x128xf32, #tpu.memory_space<vmem>>, vector<128x128xf32>
    %c0_16 = arith.constant 0 : index
    %c0_17 = arith.constant 0 : index
    %22 = vector.load %arg7[%c0_16, %c0_17] : memref<1x128xf32, #tpu.memory_space<vmem>>, vector<1x128xf32>
    %cst_18 = arith.constant dense<0.000000e+00> : vector<8x128xf32>
    %23 = tpu.matmul %20, %21, %cst_18 {dimension_numbers = #tpu.dot_dimension_numbers<[1], [0], [0], [1], [0, 0, 1, 1], [], []>} : vector<8x128xf32>, vector<128x128xf32>, vector<8x128xf32> -> vector<8x128xf32>
    %24 = vector.broadcast %22 : vector<1x128xf32> to vector<8x128xf32>
    %25 = arith.addf %23, %24 : vector<8x128xf32>
    %c0_19 = arith.constant 0 : index
    %c0_20 = arith.constant 0 : index
    %26 = vector.load %arg8[%c0_19, %c0_20] : memref<8x128xf32, #tpu.memory_space<vmem>>, vector<8x128xf32>
    tpu.vector_store %arg8[%c0_19, %c0_20], %25 {strides = array<i32>} : memref<8x128xf32, #tpu.memory_space<vmem>>, vector<8x128xf32>,
    return
  }
  func.func @transform_0(%arg0: i32) -> (i32, i32) {
    %c0_i32 = arith.constant 0 : i32
    %c0_i32_0 = arith.constant 0 : i32
    return %arg0, %c0_i32 : i32, i32
  }
  func.func @transform_1(%arg0: i32) -> (i32, i32) {
    %c0_i32 = arith.constant 0 : i32
    %c0_i32_0 = arith.constant 0 : i32
    %c0_i32_1 = arith.constant 0 : i32
    return %c0_i32, %c0_i32_0 : i32, i32
  }
  func.func @transform_2(%arg0: i32) -> (i32, i32) {
    %c0_i32 = arith.constant 0 : i32
    %c0_i32_0 = arith.constant 0 : i32
    %c0_i32_1 = arith.constant 0 : i32
    return %c0_i32, %c0_i32_0 : i32, i32
  }
  func.func @transform_3(%arg0: i32) -> (i32, i32) {
    %c0_i32 = arith.constant 0 : i32
    %c0_i32_0 = arith.constant 0 : i32
    %c0_i32_1 = arith.constant 0 : i32
    return %c0_i32, %c0_i32_0 : i32, i32
  }
  func.func @transform_4(%arg0: i32) -> (i32, i32) {
    %c0_i32 = arith.constant 0 : i32
    %c0_i32_0 = arith.constant 0 : i32
    %c0_i32_1 = arith.constant 0 : i32
    return %c0_i32, %c0_i32_0 : i32, i32
  }
  func.func @transform_5(%arg0: i32) -> (i32, i32) {
    %c0_i32 = arith.constant 0 : i32
    %c0_i32_0 = arith.constant 0 : i32
    %c0_i32_1 = arith.constant 0 : i32
    return %c0_i32, %c0_i32_0 : i32, i32
  }
  func.func @transform_6(%arg0: i32) -> (i32, i32) {
    %c0_i32 = arith.constant 0 : i32
    %c0_i32_0 = arith.constant 0 : i32
    %c0_i32_1 = arith.constant 0 : i32
    return %c0_i32, %c0_i32_0 : i32, i32
  }
  func.func @transform_7(%arg0: i32) -> (i32, i32) {
    %c0_i32 = arith.constant 0 : i32
    %c0_i32_0 = arith.constant 0 : i32
    return %arg0, %c0_i32 : i32, i32
  }
}

</mosaic_0001>

<bundles_post_ra>
// kernel: nn_forward.1
= control target key start
LH: loop header
LB: loop body
LE: loop exit
PB: predicated region body
PF: predicated region fallthrough
CT: control target
= control target key end

     0   :  { %12 = vsyncpa [#allocation3], 0  ;;  %s1194_s0 = inlined_call_operand.vmem [shape: f32[16,128], index: 0, kind: input, shape index: {}]   ;;  %s1195_s1 = inlined_call_operand.hbm [shape: f32[128,128], index: 1, kind: input, shape index: {}]   ;;  %s1196_s2 = inlined_call_operand.vmem [shape: f32[1,128], index: 2, kind: input, shape index: {}]   ;;  %s1197_s3 = inlined_call_operand.hbm [shape: f32[128,128], index: 3, kind: input, shape index: {}]   ;;  %s1198_s4 = inlined_call_operand.vmem [shape: f32[1,128], index: 4, kind: input, shape index: {}]   ;;  %s1199_s5 = inlined_call_operand.hbm [shape: f32[128,128], index: 5, kind: input, shape index: {}]   ;;  %s1200_s6 = inlined_call_operand.vmem [shape: f32[1,128], index: 6, kind: input, shape index: {}]   ;;  %s1201_s7 = inlined_call_operand.vmem [shape: f32[16,128], index: 7, kind: output, shape index: {}]  }
   0x1   :  { %13 = vsyncpa [#allocation5], 0  ;;  %s1047_s24 = smov 0  }
   0x2 LB: > { %s1053_s25 = sadd.s32 4294967295, %s998_s24   ;;  %p691_p0 = scmp.ge.s32.totalorder %s998_s24, 1  ;;  %s998_s24 = sphi %s1047_s24, %s19_s24  }
   0x3   : > { %p202_p1 = scmp.lt.s32.totalorder %s998_s24, 3  ;;  %p885_p2 = scmp.eq.s32.totalorder %s1053_s25, 0 }
   0x4   : > { %s1000_s27 = smov [#allocation4]   ;;  %s1001_s29 = smov [#allocation2]  }
   0x5   : > { %p1058_p3 = pnand %p691_p0, %p202_p1  ;;  %s230_s28 = sshll.u32 %s1000_s27, 4  ;;  %s231_s28 = int_to_ptr.vmem [resolvable:$true] %s230_s28 }
   0x6   : > { %s214_s30 = sshll.u32 %s1001_s29, 4  ;;  %s1002_s9 = smov [#allocation6]   ;;  %s215_s30 = int_to_ptr.vmem [resolvable:$true] %s214_s30 }
   0x7   : > { %p875_p4 = pneg %p1058_p3  ;;  %s246_s10 = sshll.u32 %s1002_s9, 4  ;;  %s1070_s10 = int_to_ptr.vmem [resolvable:$true] %s246_s10 }
   0x8   : > { %s917_s11 = scalar_lea.vmem %s231_s28, 2048  ;;  %p925_p10 = scmp.lt.s32.totalorder %s231_s28, %s231_s28 }
   0x9   : > { %p1066_p5 = pnand %p885_p2, %p875_p4  ;;  %p918_p7 = scmp.ne.s32.totalorder %s231_s28, %s917_s11 }
   0xa   : > { %p926_p11 = scmp.lt.s32.totalorder %s917_s11, %s917_s11 }
   0xb   : > { %p908_p6 = pneg %p1066_p5 }
   0xc   : > { %p927_p12 = por %p926_p11, %p925_p10 }
   0xd   : > { %p920_p8 = pnand %p918_p7, %p908_p6 }
   0xf   : > { %p921_p9 = pneg %p920_p8 }
  0x11   : > { %p928_p13 = pnand %p927_p12, %p921_p9 }
  0x13   : > { %931 = shalt.err (!%p928_p13)
}
  0x14   : > { %s1003_s12 = smov 128   ;;  %s1004_s13 = smov 8  }
  0x15   : > { %881 = dma.hbm_to_vmem [thread:$0]  (!%p1066_p5), %s1197_s3, 2048, %s231_s28, [#allocation5], %s1003_s12, %s1003_s12, %s1004_s13  }
  0x16   : > { %s943_s16 = scalar_lea.vmem %s215_s30, 2048  ;;  %p951_p7 = scmp.lt.s32.totalorder %s215_s30, %s215_s30 }
  0x17   : > { %p944_p0 = scmp.ne.s32.totalorder %s215_s30, %s943_s16  ;;  %p952_p8 = scmp.lt.s32.totalorder %s943_s16, %s943_s16 }
  0x19   : > { %p946_p1 = pnand %p944_p0, %p908_p6  ;;  %p953_p10 = por %p952_p8, %p951_p7 }
  0x1b   : > { %p947_p4 = pneg %p946_p1 }
  0x1d   : > { %p954_p9 = pnand %p953_p10, %p947_p4 }
  0x1f   : > { %957 = shalt.err (!%p954_p9)
}
  0x20   : > { %878 = dma.hbm_to_vmem [thread:$0]  (!%p1066_p5), %s1195_s1, 2048, %s215_s30, [#allocation3], %s1003_s12, %s1003_s12, %s1004_s13  }
  0x21   : > { %s969_s19 = scalar_lea.vmem %s1070_s10, 2048  ;;  %p977_p0 = scmp.lt.s32.totalorder %s1070_s10, %s1070_s10 }
  0x22   : > { %p970_p11 = scmp.ne.s32.totalorder %s1070_s10, %s969_s19  ;;  %p978_p1 = scmp.lt.s32.totalorder %s969_s19, %s969_s19 }
  0x24   : > { %p972_p12 = pnand %p970_p11, %p908_p6  ;;  %p979_p4 = por %p978_p1, %p977_p0 }
  0x26   : > { %p973_p13 = pneg %p972_p12 }
  0x28   : > { %p980_p7 = pnand %p979_p4, %p973_p13 }
  0x2a   : > { %983 = shalt.err (!%p980_p7)
}
  0x2b   : > { %884 = dma.hbm_to_vmem [thread:$0]  (!%p1066_p5), %s1199_s5, 2048, %s1070_s10, [#allocation5], %s1003_s12, %s1003_s12, %s1004_s13  }
  0x2c   : > { %272 = sbr.rel (%p1058_p3) target bundleno = 678 (0x2a6), region = 48 }
  0x31   : > { %989 = dma.done.wait (%p885_p2), [#allocation3], 2048  }
  0x32   : > { %991 = vsyncadd (%p885_p2), [#allocation3], 4294965248 }
  0x33   : > { %993 = dma.done.wait (%p885_p2), [#allocation5], 4096  }
  0x34   : > { %995 = vsyncadd (%p885_p2), [#allocation5], 4294963200  ;;  %v1005_v0 = vmov 0.0   ;;  %vm1006_vm0 = vmmov 0   ;;  %v334_v1 = vld [vmem:[#allocation2 + $0x78] sm:$0xff]  ;;  %v333_v2 = vld [vmem:[#allocation2 + $0x70] sm:$0xff] }
  0x35   : > { %758 = vmatprep.subr.mxu0 %v1005_v0  ;;  %790 = vmatprep.mubr.msk.f32.mxu0 %vm1006_vm0, %v1005_v0  ;;  %v332_v3 = vld [vmem:[#allocation2 + $0x68] sm:$0xff]  ;;  %v331_v4 = vld [vmem:[#allocation2 + $0x60] sm:$0xff]  ;;  %v430_v5 = vld [vmem:[#allocation4 + $0x78] sm:$0xff]  ;;  %p310_p2 = scmp.lt.s32.totalorder %s1053_s25, 1 }
  0x36   : > { %793 = vmatprep.subr.mxu1 %v1005_v0  ;;  %825 = vmatprep.mubr.msk.f32.mxu1 %vm1006_vm0, %v1005_v0  ;;  %v330_v6 = vld [vmem:[#allocation2 + $0x58] sm:$0xff]  ;;  %v429_v7 = vld [vmem:[#allocation4 + $0x70] sm:$0xff]  ;;  %v428_v8 = vld [vmem:[#allocation4 + $0x68] sm:$0xff] }
  0x37   : > { %759 = vmatpush3.msra.mxu0 %v334_v1  ;;  %794 = vmatpush3.msra.mxu1 %v430_v5  ;;  %v329_v9 = vld [vmem:[#allocation2 + $0x50] sm:$0xff]  ;;  %v427_v10 = vld [vmem:[#allocation4 + $0x60] sm:$0xff]  ;;  %v328_v11 = vld [vmem:[#allocation2 + $0x48] sm:$0xff]  ;;  %s1205_s25 = smov (!%p310_p2, %s1053_s25), 1 }
  0x38   : > { %760 = vmatprep.subr.mxu0 %v1005_v0  ;;  %795 = vmatprep.subr.mxu1 %v1005_v0  ;;  %v426_v12 = vld [vmem:[#allocation4 + $0x58] sm:$0xff]  ;;  %v327_v13 = vld [vmem:[#allocation2 + $0x40] sm:$0xff]  ;;  %v425_v14 = vld [vmem:[#allocation4 + $0x50] sm:$0xff]  ;;  %s700_s22 = sshll.u32 %s1205_s25, 3 }
  0x39   : > { %761 = vmatpush3.msra.mxu0 %v333_v2  ;;  %796 = vmatpush3.msra.mxu1 %v429_v7  ;;  %v326_v15 = vld [vmem:[#allocation2 + $0x38] sm:$0xff]  ;;  %v424_v16 = vld [vmem:[#allocation4 + $0x48] sm:$0xff]  ;;  %v325_v17 = vld [vmem:[#allocation2 + $0x30] sm:$0xff]  ;;  %s313_s27 = scalar_lea.vmem %s1194_s0, %s700_s22  ;;  %s317_s13 = scalar_lea.vmem %s1201_s7, %s700_s22 }
  0x3a   : > { %762 = vmatprep.subr.mxu0 %v1005_v0  ;;  %797 = vmatprep.subr.mxu1 %v1005_v0  ;;  %v423_v18 = vld [vmem:[#allocation4 + $0x40] sm:$0xff]  ;;  %v324_v19 = vld [vmem:[#allocation2 + $0x28] sm:$0xff]  ;;  %v422_v20 = vld [vmem:[#allocation4 + $0x38] sm:$0xff] }
  0x3b   : > { %763 = vmatpush3.msra.mxu0 %v332_v3  ;;  %798 = vmatpush3.msra.mxu1 %v428_v8  ;;  %v323_v21 = vld [vmem:[#allocation2 + $0x20] sm:$0xff]  ;;  %v421_v22 = vld [vmem:[#allocation4 + $0x30] sm:$0xff]  ;;  %v322_v23 = vld [vmem:[#allocation2 + $0x18] sm:$0xff] }
  0x3c   : > { %764 = vmatprep.subr.mxu0 %v1005_v0  ;;  %799 = vmatprep.subr.mxu1 %v1005_v0  ;;  %v420_v24 = vld [vmem:[#allocation4 + $0x28] sm:$0xff]  ;;  %v321_v25 = vld [vmem:[#allocation2 + $0x10] sm:$0xff]  ;;  %v419_v26 = vld [vmem:[#allocation4 + $0x20] sm:$0xff] }
  0x3d   : > { %765 = vmatpush3.msra.mxu0 %v331_v4  ;;  %800 = vmatpush3.msra.mxu1 %v427_v10  ;;  %v320_v27 = vld [vmem:[#allocation2 + $0x8] sm:$0xff]  ;;  %v418_v28 = vld [vmem:[#allocation4 + $0x18] sm:$0xff]  ;;  %v319_v29 = vld [vmem:[#allocation2] sm:$0xff] }
  0x3e   : > { %766 = vmatprep.subr.mxu0 %v1005_v0  ;;  %801 = vmatprep.subr.mxu1 %v1005_v0  ;;  %v318_v30 = vld [vmem:[%s313_s27] sm:$0xff]  ;;  %v417_v31 = vld [vmem:[#allocation4 + $0x10] sm:$0xff]  ;;  %v416_v32 = vld [vmem:[#allocation4 + $0x8] sm:$0xff] }
  0x3f   : > { %767 = vmatpush3.msra.mxu0 %v330_v6  ;;  %802 = vmatpush3.msra.mxu1 %v426_v12  ;;  %v415_v33 = vld [vmem:[#allocation4] sm:$0xff]  ;;  %v526_v34 = vld [vmem:[#allocation6 + $0x78] sm:$0xff]  ;;  %v525_v35 = vld [vmem:[#allocation6 + $0x70] sm:$0xff] }
  0x40   : > { %768 = vmatprep.subr.mxu0 %v1005_v0  ;;  %803 = vmatprep.subr.mxu1 %v1005_v0  ;;  %v524_v36 = vld [vmem:[#allocation6 + $0x68] sm:$0xff]  ;;  %v523_v37 = vld [vmem:[#allocation6 + $0x60] sm:$0xff]  ;;  %v522_v38 = vld [vmem:[#allocation6 + $0x58] sm:$0xff] }
  0x41   : > { %769 = vmatpush3.msra.mxu0 %v329_v9  ;;  %804 = vmatpush3.msra.mxu1 %v425_v14  ;;  %v521_v39 = vld [vmem:[#allocation6 + $0x50] sm:$0xff]  ;;  %v520_v40 = vld [vmem:[#allocation6 + $0x48] sm:$0xff]  ;;  %v519_v41 = vld [vmem:[#allocation6 + $0x40] sm:$0xff] }
  0x42   : > { %770 = vmatprep.subr.mxu0 %v1005_v0  ;;  %805 = vmatprep.subr.mxu1 %v1005_v0  ;;  %v518_v42 = vld [vmem:[#allocation6 + $0x38] sm:$0xff]  ;;  %v517_v43 = vld [vmem:[#allocation6 + $0x30] sm:$0xff]  ;;  %v516_v44 = vld [vmem:[#allocation6 + $0x28] sm:$0xff] }
  0x43   : > { %771 = vmatpush3.msra.mxu0 %v328_v11  ;;  %806 = vmatpush3.msra.mxu1 %v424_v16  ;;  %v515_v45 = vld [vmem:[#allocation6 + $0x20] sm:$0xff]  ;;  %v514_v46 = vld [vmem:[#allocation6 + $0x18] sm:$0xff]  ;;  %v513_v53 = vld [vmem:[#allocation6 + $0x10] sm:$0xff] }
  0x44   : > { %772 = vmatprep.subr.mxu0 %v1005_v0  ;;  %807 = vmatprep.subr.mxu1 %v1005_v0  ;;  %v702_v47 = vld [vmem:[%s1196_s2] ss:$0 sm:$0xff]  ;;  %v512_v54 = vld [vmem:[#allocation6 + $0x8] sm:$0xff] }
  0x45   : > { %773 = vmatpush3.msra.mxu0 %v327_v13  ;;  %808 = vmatpush3.msra.mxu1 %v423_v18  ;;  %v511_v55 = vld [vmem:[#allocation6] sm:$0xff] }
  0x46   : > { %774 = vmatprep.subr.mxu0 %v1005_v0  ;;  %809 = vmatprep.subr.mxu1 %v1005_v0  ;;  %v703_v56 = vld [vmem:[%s1198_s4] ss:$0 sm:$0xff] }
  0x47   : > { %775 = vmatpush3.msra.mxu0 %v326_v15  ;;  %810 = vmatpush3.msra.mxu1 %v422_v20  ;;  %v704_v62 = vld [vmem:[%s1200_s6] ss:$0 sm:$0xff] }
  0x48   : > { %776 = vmatprep.subr.mxu0 %v1005_v0  ;;  %811 = vmatprep.subr.mxu1 %v1005_v0 }
  0x49   : > { %777 = vmatpush3.msra.mxu0 %v325_v17  ;;  %812 = vmatpush3.msra.mxu1 %v421_v22 }
  0x4a   : > { %778 = vmatprep.subr.mxu0 %v1005_v0  ;;  %813 = vmatprep.subr.mxu1 %v1005_v0 }
  0x4b   : > { %779 = vmatpush3.msra.mxu0 %v324_v19  ;;  %814 = vmatpush3.msra.mxu1 %v420_v24 }
  0x4c   : > { %780 = vmatprep.subr.mxu0 %v1005_v0  ;;  %815 = vmatprep.subr.mxu1 %v1005_v0 }
  0x4d   : > { %781 = vmatpush3.msra.mxu0 %v323_v21  ;;  %816 = vmatpush3.msra.mxu1 %v419_v26 }
  0x4e   : > { %782 = vmatprep.subr.mxu0 %v1005_v0  ;;  %817 = vmatprep.subr.mxu1 %v1005_v0 }
  0x4f   : > { %783 = vmatpush3.msra.mxu0 %v322_v23  ;;  %818 = vmatpush3.msra.mxu1 %v418_v28 }
  0x50   : > { %784 = vmatprep.subr.mxu0 %v1005_v0  ;;  %819 = vmatprep.subr.mxu1 %v1005_v0 }
  0x51   : > { %785 = vmatpush3.msra.mxu0 %v321_v25  ;;  %820 = vmatpush3.msra.mxu1 %v417_v31 }
  0x52   : > { %786 = vmatprep.subr.mxu0 %v1005_v0  ;;  %821 = vmatprep.subr.mxu1 %v1005_v0 }
  0x53   : > { %787 = vmatpush3.msra.mxu0 %v320_v27  ;;  %822 = vmatpush3.msra.mxu1 %v416_v32 }
  0x54   : > { %788 = vmatprep.subr.mxu0 %v1005_v0  ;;  %823 = vmatprep.subr.mxu1 %v1005_v0 }
  0x55   : > { %789 = vmatpush3.msra.mxu0 %v319_v29  ;;  %824 = vmatpush3.msra.mxu1 %v415_v33 }
  0x56   : > { %791 = vmatmul.mubr.f32.vlgmr.msra.gmra.mxu0 %v318_v30  ;;  %828 = vmatprep.subr.mxu0 %v1005_v0 }
  0x57   : > { %860 = vmatprep.mubr.msk.f32.mxu0 %vm1006_vm0, %v1005_v0  ;;  %829 = vmatpush3.msra.mxu0 %v526_v34 }
  0x58   : > { %830 = vmatprep.subr.mxu0 %v1005_v0 }
  0x59   : > { %831 = vmatpush3.msra.mxu0 %v525_v35 }
  0x5a   : > { %832 = vmatprep.subr.mxu0 %v1005_v0 }
  0x5b   : > { %833 = vmatpush3.msra.mxu0 %v524_v36 }
  0x5c   : > { %834 = vmatprep.subr.mxu0 %v1005_v0 }
  0x5d   : > { %835 = vmatpush3.msra.mxu0 %v523_v37 }
  0x5e   : > { %836 = vmatprep.subr.mxu0 %v1005_v0 }
  0x5f   : > { %837 = vmatpush3.msra.mxu0 %v522_v38 }
  0x60   : > { %838 = vmatprep.subr.mxu0 %v1005_v0 }
  0x61   : > { %839 = vmatpush3.msra.mxu0 %v521_v39 }
  0x62   : > { %840 = vmatprep.subr.mxu0 %v1005_v0 }
  0x63   : > { %841 = vmatpush3.msra.mxu0 %v520_v40 }
  0x64   : > { %842 = vmatprep.subr.mxu0 %v1005_v0 }
  0x65   : > { %843 = vmatpush3.msra.mxu0 %v519_v41 }
  0x66   : > { %844 = vmatprep.subr.mxu0 %v1005_v0 }
  0x67   : > { %845 = vmatpush3.msra.mxu0 %v518_v42 }
  0x68   : > { %846 = vmatprep.subr.mxu0 %v1005_v0 }
  0x69   : > { %847 = vmatpush3.msra.mxu0 %v517_v43 }
  0x6a   : > { %848 = vmatprep.subr.mxu0 %v1005_v0 }
  0x6b   : > { %849 = vmatpush3.msra.mxu0 %v516_v44 }
  0x6c   : > { %850 = vmatprep.subr.mxu0 %v1005_v0 }
  0x6d   : > { %851 = vmatpush3.msra.mxu0 %v515_v45 }
  0x6e   : > { %852 = vmatprep.subr.mxu0 %v1005_v0 }
  0x6f   : > { %853 = vmatpush3.msra.mxu0 %v514_v46 }
  0x70   : > { %854 = vmatprep.subr.mxu0 %v1005_v0 }
  0x71   : > { %855 = vmatpush3.msra.mxu0 %v513_v53 }
  0x72   : > { %856 = vmatprep.subr.mxu0 %v1005_v0 }
  0x73   : > { %857 = vmatpush3.msra.mxu0 %v512_v54 }
  0x74   : > { %858 = vmatprep.subr.mxu0 %v1005_v0 }
  0x75   : > { %859 = vmatpush3.msra.mxu0 %v511_v55 }
 0x116   : > { %v408_v48 = vpop.f32.mrf.mxu0 }
 0x117   : > { %v409_v49 = vadd.f32 %v702_v47, %v408_v48 }
 0x118   : > { %v792_v50 = vpop.f32.mrf.mxu0 }
 0x119   : > { %v413_v51 = vmul.f32 0.01, %v409_v49  ;;  %vm412_vm1 = vcmp.ge.f32.partialorder %v409_v49, 0.0 }
 0x11b   : > { %v414_v52 = vsel %vm412_vm1, %v409_v49, %v413_v51 }
 0x11c   : > { %826 = vmatmul.mubr.f32.vlgmr.msra.gmra.mxu1 %v414_v52 }
 0x1dc   : > { %v504_v57 = vpop.f32.mrf.mxu1 }
 0x1dd   : > { %v505_v58 = vadd.f32 %v703_v56, %v504_v57 }
 0x1de   : > { %v827_v59 = vpop.f32.mrf.mxu1 }
 0x1df   : > { %vm508_vm2 = vcmp.ge.f32.partialorder %v505_v58, 0.0  ;;  %v509_v60 = vmul.f32 0.01, %v505_v58 }
 0x1e1   : > { %v510_v61 = vsel %vm508_vm2, %v505_v58, %v509_v60 }
 0x1e2   : > { %861 = vmatmul.mubr.f32.vlgmr.msra.gmra.mxu0 %v510_v61 }
 0x2a2   : > { %v600_v63 = vpop.f32.mrf.mxu0 }
 0x2a3   : > { %v601_v0 = vadd.f32 %v704_v62, %v600_v63 }
 0x2a4   : > { %v862_v1 = vpop.f32.mrf.mxu0 }
 0x2a5   : > { %604 = vst [vmem:[%s317_s13] sm:$0xff] %v601_v0 }
 0x2a6 PF: > { %s19_s24 = sadd.s32 1, %s998_s24  }
 0x2a7   : > { %p16_p3 = scmp.ge.s32.totalorder %s19_s24, 4  }
 0x2a9   :  { %18 = sbr.rel (!%p16_p3) target bundleno = 2 (0x2), region = 91 }
 0x2ae   :  { %624 = vsyncpa [#allocation3], 1 }
 0x2af   :  { %626 = vsyncpa [#allocation3 + $0x1], 1 }
 0x2b0   :  { %627 = vsyncpa [#allocation5], 1 }

</bundles_post_ra>
